<compile_context>
chip_gen: v6e
topology: v6e:2x2x1
jax: 0.10.0
libtpu: 0.0.40
codegen_flags: <defaults>
</compile_context>

<pallas_src>
import jax
import jax.numpy as jnp
from jax.experimental import pallas as pl
from jax.experimental.pallas import tpu as pltpu


def _round_up(n: int, m: int) -> int:
    return ((n + m - 1) // m) * m


_H_CHUNK = 512  # hidden-dim chunk width (bounds f32 intermediates / W slabs)


def _mlp_func_kernel(x_ref, w1_ref, b1_ref, w2_ref, b2_ref, o_ref):
    """Fused func(x) = tanh(x @ W1 + b1) @ W2 + b2 for one (TM, Dp) batch tile.

    x arrives as f32 (no wrapper-side cast pass) and is cast to bf16 here;
    both matmuls accumulate in f32 on the MXU; biases are added in f32.
    The hidden dim is processed in <=512-wide chunks so the f32 (TM, Hc)
    activation and per-chunk weight slabs stay small for large H.
    """
    x = x_ref[...].astype(jnp.bfloat16)              # (TM, Dp)
    Hp = w1_ref.shape[1]

    y = None
    for c0 in range(0, Hp, _H_CHUNK):                # static, fully unrolled
        hc = min(_H_CHUNK, Hp - c0)
        h = jnp.dot(x, w1_ref[:, c0:c0 + hc],
                    preferred_element_type=jnp.float32)
        h = h + b1_ref[:, c0:c0 + hc]                # (1, hc) broadcasts over rows
        h = jnp.tanh(h).astype(jnp.bfloat16)         # bf16 for the second MXU pass
        part = jnp.dot(h, w2_ref[c0:c0 + hc, :],
                       preferred_element_type=jnp.float32)
        y = part if y is None else y + part

    o_ref[...] = (y + b2_ref[...]).astype(o_ref.dtype)


def prepare_params(w1, b1, w2, b2):
    """Pad/cast the velocity-field weights ONCE (hoisted out of the per-eval path)."""
    D, H = w1.shape
    Dp, Hp = _round_up(D, 128), _round_up(H, 128)
    b1 = jnp.reshape(b1, (1, -1))
    b2 = jnp.reshape(b2, (1, -1))
    w1p = jnp.zeros((Dp, Hp), jnp.bfloat16).at[:D, :H].set(w1.astype(jnp.bfloat16))
    b1p = jnp.zeros((1, Hp), jnp.float32).at[:, :H].set(b1.astype(jnp.float32))
    w2p = jnp.zeros((Hp, Dp), jnp.bfloat16).at[:H, :D].set(w2.astype(jnp.bfloat16))
    b2p = jnp.zeros((1, Dp), jnp.float32).at[:, :D].set(b2.astype(jnp.float32))
    return dict(w1=w1p, b1=b1p, w2=w2p, b2=b2p, D=D, H=H, Dp=Dp, Hp=Hp)


def mlp_func(x, prepared, *, tm_max: int = 512, out_dtype=None):
    """Pallas call for the inner velocity field on pre-padded weights."""
    B, D = x.shape
    assert D == prepared["D"], "feature dim mismatch with prepared weights"
    Dp, Hp = prepared["Dp"], prepared["Hp"]
    out_dtype = out_dtype or x.dtype

    # Batch tile: big enough to amortize per-step overhead, but keep >= 2 grid
    # steps when B allows so the "parallel" axis shards across v7x's 2 TCs
    # (no-op on v5e/v6e which have a single TensorCore).
    TM = min(tm_max, max(8, _round_up((B + 1) // 2, 8)))
    Bp = _round_up(B, TM)

    # Only materialize a padded copy of x when padding is actually needed;
    # otherwise the f32 input streams straight into the pipeline (cast in-kernel).
    if Bp == B and Dp == D:
        xp = x
    else:
        xp = jnp.zeros((Bp, Dp), x.dtype).at[:B, :D].set(x)

    grid = (Bp // TM,)

    xbytes = jnp.dtype(xp.dtype).itemsize
    obytes = jnp.dtype(out_dtype).itemsize
    wbytes = (Dp * Hp + Hp * Dp) * 2 + (Hp + Dp) * 4
    hc = min(Hp, _H_CHUNK)
    # double-buffered x/out tiles + (double-buffered) weights + f32 intermediates
    est = (2 * TM * Dp * xbytes + 2 * TM * Dp * obytes + 2 * wbytes
           + 4 * TM * hc + 4 * TM * Dp + 2 * TM * Dp)
    vmem_limit = int(max(32 << 20, min(2 * est + (4 << 20), 100 << 20)))

    cost = pl.CostEstimate(
        flops=4 * Bp * Dp * Hp,
        transcendentals=Bp * Hp,
        bytes_accessed=Bp * Dp * xbytes + wbytes + Bp * Dp * obytes,
    )

    out = pl.pallas_call(
        _mlp_func_kernel,
        out_shape=jax.ShapeDtypeStruct((Bp, Dp), out_dtype),
        grid=grid,
        in_specs=[
            pl.BlockSpec((TM, Dp), lambda i: (i, 0)),   # x tile: pipelined over batch
            pl.BlockSpec((Dp, Hp), lambda i: (0, 0)),   # W1: VMEM-resident
            pl.BlockSpec((1, Hp), lambda i: (0, 0)),    # b1: VMEM-resident
            pl.BlockSpec((Hp, Dp), lambda i: (0, 0)),   # W2: VMEM-resident
            pl.BlockSpec((1, Dp), lambda i: (0, 0)),    # b2: VMEM-resident
        ],
        out_specs=pl.BlockSpec((TM, Dp), lambda i: (i, 0)),
        compiler_params=pltpu.CompilerParams(
            dimension_semantics=("parallel",),          # megacore-shardable on v7x
            vmem_limit_bytes=vmem_limit,
        ),
        cost_estimate=cost,
    )(xp, prepared["w1"], prepared["b1"], prepared["w2"], prepared["b2"])

    if Bp != B or Dp != D:
        out = out[:B, :D]
    return out


def make_ode_func(params):
    """Prepare weights once; return a t-ignoring closure usable by an ODE solver."""
    prepared = prepare_params(*params)

    def ode_func(t, x, *, out_dtype=None):
        del t  # ODEwrapperNoTime ignores time
        return mlp_func(x, prepared, out_dtype=out_dtype)

    return ode_func
    # TODO(synk): for a real ODE solve, fuse multiple RK substeps / solver
    # evaluations per pallas_call (extra "arbitrary" grid axis, weights resident,
    # x carried via input_output_aliases) so launch + weight DMA amortize.


def ode_wrapper_no_time(t, x, params):
    """Exact semantics of ODEwrapperNoTime.forward: ignore t, return func(x)."""
    return make_ode_func(params)(t, x)


def init_params(key, dim, hidden):
    """Deterministic synthetic parameters (stand-in for the wrapped func's weights)."""
    k1, k2, k3, k4 = jax.random.split(key, 4)
    w1 = jax.random.normal(k1, (dim, hidden), jnp.float32) * 0.1
    b1 = jax.random.normal(k2, (1, hidden), jnp.float32) * 0.01
    w2 = jax.random.normal(k3, (hidden, dim), jnp.float32) * 0.1
    b2 = jax.random.normal(k4, (1, dim), jnp.float32) * 0.01
    return (w1, b1, w2, b2)


def _reference(x, params):
    """Pure-JAX reference with the same bf16 input rounding / f32 accumulation."""
    w1, b1, w2, b2 = params
    xb = x.astype(jnp.bfloat16).astype(jnp.float32)
    w1b = w1.astype(jnp.bfloat16).astype(jnp.float32)
    w2b = w2.astype(jnp.bfloat16).astype(jnp.float32)
    hp = jnp.dot(xb, w1b, precision=jax.lax.Precision.HIGHEST) + b1
    h = jnp.tanh(hp).astype(jnp.bfloat16).astype(jnp.float32)
    return jnp.dot(h, w2b, precision=jax.lax.Precision.HIGHEST) + b2


if __name__ == "__main__":
    key = jax.random.PRNGKey(0)

    # ---- lane-dense "real" size: B multiple of 8, D/H multiples of 128 ----
    B, D, H = 256, 128, 256
    kx, kp, key = jax.random.split(key, 3)
    x = jax.random.normal(kx, (B, D), jnp.float32)
    params = init_params(kp, D, H)

    ode_func = make_ode_func(params)          # weights padded/cast exactly once
    t = jnp.float32(0.3)                      # arbitrary — the wrapper ignores it

    dxdt = ode_func(t, x)
    jax.block_until_ready(dxdt)

    ref = _reference(x, params)
    assert dxdt.shape == x.shape and dxdt.dtype == x.dtype
    assert jnp.allclose(dxdt, ref, atol=1e-3, rtol=1e-3)

    # t-invariance (the whole point of ODEwrapperNoTime), reusing prepared weights
    dxdt2 = ode_func(jnp.float32(99.0), x)
    jax.block_until_ready(dxdt2)
    assert jnp.allclose(dxdt, dxdt2)

    # Optional bf16 writeback (halves the dominant output HBM stream)
    dxdt_bf16 = ode_func(t, x, out_dtype=jnp.bfloat16)
    jax.block_until_ready(dxdt_bf16)
    assert dxdt_bf16.dtype == jnp.bfloat16
    assert jnp.allclose(dxdt_bf16.astype(jnp.float32), ref, atol=3e-2, rtol=3e-2)

    # ---- small, non-aligned size (original pygot-like dims): padding path ----
    Bs, Ds, Hs = 8, 16, 32
    kx2, kp2 = jax.random.split(key)
    xs = jax.random.normal(kx2, (Bs, Ds), jnp.float32)
    params_s = init_params(kp2, Ds, Hs)
    dxdt_s = ode_wrapper_no_time(jnp.float32(1.5), xs, params_s)
    jax.block_until_ready(dxdt_s)
    ref_s = _reference(xs, params_s)
    assert dxdt_s.shape == xs.shape
    assert jnp.allclose(dxdt_s, ref_s, atol=1e-3, rtol=1e-3)

    print("KERNEL_OK")
</pallas_src>

<mosaic_0001>
module attributes {stable_mosaic.version = 11 : i64} {
  func.func @_mlp_func_kernel(%arg0: i32, %arg1: memref<128x128xf32, #tpu.memory_space<vmem>>, %arg2: memref<128x256xbf16, #tpu.memory_space<vmem>>, %arg3: memref<1x256xf32, #tpu.memory_space<vmem>>, %arg4: memref<256x128xbf16, #tpu.memory_space<vmem>>, %arg5: memref<1x128xf32, #tpu.memory_space<vmem>>, %arg6: memref<128x128xf32, #tpu.memory_space<vmem>>) attributes {dimension_semantics = [#tpu.dimension_semantics<parallel>], iteration_bounds = array<i64: 2>, scalar_prefetch = 0 : i64, scratch_operands = 0 : i64, tpu.core_type = #tpu.core_type<tc>, window_params = [{transform_indices = @transform_0, window_bounds = array<i64: 128, 128>}, {pipeline_mode = #tpu.pipeline_mode<synchronous>, transform_indices = @transform_1, window_bounds = array<i64: 128, 256>}, {pipeline_mode = #tpu.pipeline_mode<synchronous>, transform_indices = @transform_2, window_bounds = array<i64: 1, 256>}, {pipeline_mode = #tpu.pipeline_mode<synchronous>, transform_indices = @transform_3, window_bounds = array<i64: 256, 128>}, {pipeline_mode = #tpu.pipeline_mode<synchronous>, transform_indices = @transform_4, window_bounds = array<i64: 1, 128>}, {transform_indices = @transform_5, window_bounds = array<i64: 128, 128>}]} {
    %c0 = arith.constant 0 : index
    %c0_0 = arith.constant 0 : index
    %0 = vector.load %arg1[%c0, %c0_0] : memref<128x128xf32, #tpu.memory_space<vmem>>, vector<128x128xf32>
    %1 = arith.truncf %0 : vector<128x128xf32> to vector<128x128xbf16>
    %c0_1 = arith.constant 0 : index
    %c0_2 = arith.constant 0 : index
    %2 = vector.load %arg2[%c0_1, %c0_2] : memref<128x256xbf16, #tpu.memory_space<vmem>>, vector<128x256xbf16>
    %cst = arith.constant dense<0.000000e+00> : vector<128x256xf32>
    %3 = tpu.matmul %1, %2, %cst {dimension_numbers = #tpu.dot_dimension_numbers<[1], [0], [0], [1], [0, 0, 1, 1], [], []>} : vector<128x128xbf16>, vector<128x256xbf16>, vector<128x256xf32> -> vector<128x256xf32>
    %c0_3 = arith.constant 0 : index
    %c0_4 = arith.constant 0 : index
    %4 = vector.load %arg3[%c0_3, %c0_4] : memref<1x256xf32, #tpu.memory_space<vmem>>, vector<1x256xf32>
    %5 = vector.broadcast %4 : vector<1x256xf32> to vector<128x256xf32>
    %6 = arith.addf %3, %5 : vector<128x256xf32>
    %7 = math.tanh %6 : vector<128x256xf32>
    %8 = arith.truncf %7 : vector<128x256xf32> to vector<128x256xbf16>
    %c0_5 = arith.constant 0 : index
    %c0_6 = arith.constant 0 : index
    %9 = vector.load %arg4[%c0_5, %c0_6] : memref<256x128xbf16, #tpu.memory_space<vmem>>, vector<256x128xbf16>
    %cst_7 = arith.constant dense<0.000000e+00> : vector<128x128xf32>
    %10 = tpu.matmul %8, %9, %cst_7 {dimension_numbers = #tpu.dot_dimension_numbers<[1], [0], [0], [1], [0, 0, 1, 1], [], []>} : vector<128x256xbf16>, vector<256x128xbf16>, vector<128x128xf32> -> vector<128x128xf32>
    %c0_8 = arith.constant 0 : index
    %c0_9 = arith.constant 0 : index
    %11 = vector.load %arg5[%c0_8, %c0_9] : memref<1x128xf32, #tpu.memory_space<vmem>>, vector<1x128xf32>
    %12 = vector.broadcast %11 : vector<1x128xf32> to vector<128x128xf32>
    %13 = arith.addf %10, %12 : vector<128x128xf32>
    %c0_10 = arith.constant 0 : index
    %c0_11 = arith.constant 0 : index
    %14 = vector.load %arg6[%c0_10, %c0_11] : memref<128x128xf32, #tpu.memory_space<vmem>>, vector<128x128xf32>
    tpu.vector_store %arg6[%c0_10, %c0_11], %13 {strides = array<i32>} : memref<128x128xf32, #tpu.memory_space<vmem>>, vector<128x128xf32>,
    return
  }
  func.func @transform_0(%arg0: i32) -> (i32, i32) {
    %c0_i32 = arith.constant 0 : i32
    %c0_i32_0 = arith.constant 0 : i32
    return %arg0, %c0_i32 : i32, i32
  }
  func.func @transform_1(%arg0: i32) -> (i32, i32) {
    %c0_i32 = arith.constant 0 : i32
    %c0_i32_0 = arith.constant 0 : i32
    %c0_i32_1 = arith.constant 0 : i32
    return %c0_i32, %c0_i32_0 : i32, i32
  }
  func.func @transform_2(%arg0: i32) -> (i32, i32) {
    %c0_i32 = arith.constant 0 : i32
    %c0_i32_0 = arith.constant 0 : i32
    %c0_i32_1 = arith.constant 0 : i32
    return %c0_i32, %c0_i32_0 : i32, i32
  }
  func.func @transform_3(%arg0: i32) -> (i32, i32) {
    %c0_i32 = arith.constant 0 : i32
    %c0_i32_0 = arith.constant 0 : i32
    %c0_i32_1 = arith.constant 0 : i32
    return %c0_i32, %c0_i32_0 : i32, i32
  }
  func.func @transform_4(%arg0: i32) -> (i32, i32) {
    %c0_i32 = arith.constant 0 : i32
    %c0_i32_0 = arith.constant 0 : i32
    %c0_i32_1 = arith.constant 0 : i32
    return %c0_i32, %c0_i32_0 : i32, i32
  }
  func.func @transform_5(%arg0: i32) -> (i32, i32) {
    %c0_i32 = arith.constant 0 : i32
    %c0_i32_0 = arith.constant 0 : i32
    return %arg0, %c0_i32 : i32, i32
  }
}

</mosaic_0001>

<bundles_post_ra>
// kernel: tpu_custom_call.1
= control target key start
LH: loop header
LB: loop body
LE: loop exit
PB: predicated region body
PF: predicated region fallthrough
CT: control target
= control target key end

     0   :  { %10 = vsyncpa [#allocation3], 0  ;;  %s1711_s0 = inlined_call_operand.hbm [shape: f32[256,128], index: 0, kind: input, shape index: {}]   ;;  %s1712_s1 = inlined_call_operand.hbm [shape: bf16[128,256], index: 1, kind: input, shape index: {}]   ;;  %s1713_s2 = inlined_call_operand.vmem [shape: f32[1,256], index: 2, kind: input, shape index: {}]   ;;  %s1714_s3 = inlined_call_operand.hbm [shape: bf16[256,128], index: 3, kind: input, shape index: {}]   ;;  %s1715_s4 = inlined_call_operand.vmem [shape: f32[1,128], index: 4, kind: input, shape index: {}]   ;;  %s1716_s5 = inlined_call_operand.hbm [shape: f32[256,128], index: 5, kind: output, shape index: {}]  }
   0x1   :  { %12 = vsyncpa [#allocation3 + $0x1], 0 }
   0x2   :  { %13 = vsyncpa [#allocation6], 0 }
   0x3   :  { %14 = vsyncpa [#allocation4], 0 }
   0x4   :  { %16 = vsyncpa [#allocation4 + $0x1], 0  ;;  %s1408_s18 = smov 0   ;;  %s1410_s19 = smov 0  }
   0x5   :  { %s1412_s20 = smov 0   ;;  %s1414_s21 = smov 0  }
   0x6 LB: > { %s1429_s22 = sadd.s32 4294967295, %s1365_s21   ;;  %s922_s23 = sadd.s32 4294967294, %s1365_s21   ;;  %s1365_s21 = sphi %s1414_s21, %s1739_s21   ;;  %s1361_s20 = sphi %s1412_s20, %s1738_s20   ;;  %s1357_s19 = sphi %s1410_s19, %s1737_s19   ;;  %s1353_s18 = sphi %s1408_s18, %s1736_s18  }
   0x7   : > { %p42_p0 = scmp.ne.s32.totalorder %s1357_s19, %s1353_s18  ;;  %p1717_p1 = scmp.eq.s32.totalorder %s1429_s22, 0 }
   0x8   : > { %p150_p2 = scmp.eq.s32.totalorder %s1429_s22, 1  ;;  %p156_p3 = scmp.eq.s32.totalorder %s922_s23, 1 }
   0x9   : > { %p1438_p4 = por %p1717_p1, %p42_p0  ;;  %p923_p5 = scmp.ge.s32.totalorder %s1365_s21, 1 }
   0xa   : > { %p1443_p6 = por %p156_p3, %p42_p0  ;;  %p163_p7 = scmp.lt.s32.totalorder %s1365_s21, 3 }
   0xb   : > { %s1722_s24 = scalar_select %p1438_p4, 1, 0 }
   0xc   : > { %s1723_s25 = scalar_select %p1443_p6, 1, 0 }
   0xd   : > { %p1448_p8 = pnand %p923_p5, %p163_p7  ;;  %s1367_s27 = smov [#allocation5]  }
   0xe   : > { %s175_s28 = sshll.u32 %s1367_s27, 4  ;;  %s1368_s30 = smov [#allocation7]   ;;  %s176_s28 = int_to_ptr.vmem [resolvable:$true] %s175_s28 }
   0xf   : > { %s1724_s26 = scalar_select %p1448_p8, 1, 0 }
  0x10   : > { %p1051_p9 = pneg %p1448_p8  ;;  %s191_s6 = sshll.u32 %s1368_s30, 4  ;;  %s192_s6 = int_to_ptr.vmem [resolvable:$true] %s191_s6 }
  0x11   : > { %s1228_s7 = scalar_lea.vmem %s176_s28, 2048  ;;  %p1236_p5 = scmp.lt.s32.totalorder %s176_s28, %s176_s28 }
  0x12   : > { %p1457_p11 = pnand %p1051_p9, %p1717_p1  ;;  %p1229_p13 = scmp.ne.s32.totalorder %s176_s28, %s1228_s7 }
  0x13   : > { %p1237_p7 = scmp.lt.s32.totalorder %s1228_s7, %s1228_s7 }
  0x14   : > { %p1219_p12 = pneg %p1457_p11 }
  0x15   : > { %p1238_p10 = por %p1237_p7, %p1236_p5 }
  0x16   : > { %p1231_p0 = pnand %p1229_p13, %p1219_p12 }
  0x18   : > { %p1232_p3 = pneg %p1231_p0 }
  0x1a   : > { %p1239_p9 = pnand %p1238_p10, %p1232_p3 }
  0x1c   : > { %1242 = shalt.err (!%p1239_p9)
}
  0x1d   : > { %s1718_s8 = smov 128   ;;  %s1370_s9 = smov 8  }
  0x1e   : > { %1054 = dma.hbm_to_vmem [thread:$0]  (!%p1457_p11), %s1712_s1, 2048, %s176_s28, [#allocation6], %s1718_s8, %s1718_s8, %s1370_s9  }
  0x1f   : > { %s1254_s12 = scalar_lea.vmem %s192_s6, 2048  ;;  %p1262_p10 = scmp.lt.s32.totalorder %s192_s6, %s192_s6 }
  0x20   : > { %p1255_p13 = scmp.ne.s32.totalorder %s192_s6, %s1254_s12  ;;  %p1263_p3 = scmp.lt.s32.totalorder %s1254_s12, %s1254_s12 }
  0x22   : > { %p1257_p0 = pnand %p1255_p13, %p1219_p12  ;;  %p1264_p7 = por %p1263_p3, %p1262_p10 }
  0x24   : > { %p1258_p5 = pneg %p1257_p0 }
  0x26   : > { %p1265_p9 = pnand %p1264_p7, %p1258_p5 }
  0x28   : > { %1268 = shalt.err (!%p1265_p9)
}
  0x29   : > { %s1371_s13 = smov 64   ;;  %s1372_s14 = smov 4  }
  0x2a   : > { %1057 = dma.hbm_to_vmem [thread:$0]  (!%p1457_p11), %s1714_s3, 2048, %s192_s6, [#allocation6], %s1371_s13, %s1371_s13, %s1372_s14  }
  0x2b   : > { %s1483_s17 = sadd.s32 1, %s1365_s21   ;;  %s29_s27 = sadd.s32 1, %s1361_s20 }
  0x2c   : > { %s26_s23 = ssub.s32 %s1365_s21, %s1483_s17  ;;  %p36_p13 = scmp.ne.s32.totalorder %s1361_s20, %s1357_s19 }
  0x2d   : > { %p27_p12 = scmp.eq.s32.totalorder %s26_s23, 0  ;;  %p37_p0 = scmp.eq.s32.totalorder %s1365_s21, 0 }
  0x2e   : > { %p1496_p10 = por %p150_p2, %p36_p13  ;;  %p1068_p3 = scmp.lt.s32.totalorder %s1365_s21, 2 }
  0x2f   : > { %s1492_s28 = scalar_select %p27_p12, %s1361_s20, %s29_s27  }
  0x30   : > { %p38_p5 = por %p37_p0, %p36_p13  ;;  %s208_s29 = sand.u32 1, %s1361_s20  }
  0x31   : > { %s1726_s30 = scalar_select %p1496_p10, 1, 0 }
  0x32   : > { %s927_s7 = sshll.u32 %s208_s29, 7  ;;  %s973_s6 = sshll.u32 %s1365_s21, 11 }
  0x33   : > { %s1506_s12 = scalar_lea.hbm %s1711_s0, %s973_s6  ;;  %s212_s13 = scalar_lea.vmem [#allocation2], %s927_s7 }
  0x34   : > { %s219_s14 = sshll.u32 %s212_s13, 4  ;;  %p1510_p2 = pnand %p1068_p3, %p38_p5  ;;  %s1508_s14 = int_to_ptr.vmem [resolvable:$true] %s219_s14 }
  0x35   : > { %s1514_s16 = scalar_lea.sflag [#allocation3], %s208_s29  ;;  %s1269_s23 = scalar_lea.hbm %s1506_s12, 2048 }
  0x36   : > { %p1270_p11 = scmp.ne.s32.totalorder %s1506_s12, %s1269_s23  ;;  %p1271_p7 = pneg %p1510_p2 }
  0x37   : > { %s1274_s7 = scalar_lea.hbm %s1711_s0, 4096  ;;  %p1275_p13 = scmp.lt.s32.totalorder %s1506_s12, %s1711_s0 }
  0x38   : > { %p1272_p9 = pnand %p1271_p7, %p1270_p11  ;;  %p1276_p0 = scmp.lt.s32.totalorder %s1274_s7, %s1269_s23 }
  0x3a   : > { %p1273_p12 = pneg %p1272_p9  ;;  %p1277_p5 = por %p1276_p0, %p1275_p13 }
  0x3c   : > { %p1278_p3 = pnand %p1277_p5, %p1273_p12 }
  0x3e   : > { %1281 = shalt.err (!%p1278_p3)
}
  0x3f   : > { %s1282_s29 = scalar_lea.vmem %s1508_s14, 2048  ;;  %s1373_s13 = smov [#allocation2]  }
  0x40   : > { %p1283_p1 = scmp.ne.s32.totalorder %s1508_s14, %s1282_s29  ;;  %s1287_s8 = sshll.u32 %s1373_s13, 4  ;;  %s1288_s8 = int_to_ptr.vmem [resolvable:$false] %s1287_s8 }
  0x41   : > { %s1289_s27 = scalar_lea.vmem %s1288_s8, 4096  ;;  %p1290_p9 = scmp.lt.s32.totalorder %s1508_s14, %s1288_s8 }
  0x42   : > { %p1285_p6 = pnand %p1283_p1, %p1271_p7  ;;  %p1291_p10 = scmp.lt.s32.totalorder %s1289_s27, %s1282_s29 }
  0x44   : > { %p1286_p11 = pneg %p1285_p6  ;;  %p1292_p4 = por %p1291_p10, %p1290_p9 }
  0x46   : > { %p1293_p8 = pnand %p1292_p4, %p1286_p11 }
  0x48   : > { %1296 = shalt.err (!%p1293_p8)
}
  0x49   : > { %s1728_s23 = smov 128   ;;  %p1729_p1 = scmp.ne.s32.totalorder %s1724_s26, 0 }
  0x4a   : > { %1061 = dma.hbm_to_vmem [thread:$0]  (!%p1510_p2), %s1506_s12, 2048, %s1508_s14, %s1514_s16, %s1728_s23, %s1728_s23, %s1370_s9  }
  0x4b   : > { %231 = sbr.rel (%p1729_p1) target bundleno = 608 (0x260), region = 40  ;;  %s1541_s6 = sand.u32 (!%p1729_p1), 1, %s1357_s19  }
  0x4c   : > { %s931_s8 = sshll.u32 (!%p1729_p1), %s1541_s6, 7  ;;  %s234_s7 = scalar_lea.sflag (!%p1729_p1), [#allocation3], %s1541_s6 }
  0x4d   : > { %s1547_s15 = scalar_lea.vmem (!%p1729_p1), [#allocation2], %s931_s8  ;;  %p1730_p4 = scmp.ne.s32.totalorder (!%p1729_p1), %s1722_s24, 0 }
  0x50   : > { %1340 = dma.done.wait (%p1730_p4), %s234_s7, 2048  }
  0x51   : > { %1342 = vsyncadd (%p1730_p4), %s234_s7, 4294965248  ;;  %p1731_p6 = scmp.eq.s32.totalorder %s1429_s22, 0 }
  0x53   : > { %1344 = dma.done.wait (%p1731_p6), [#allocation6], 4096   ;;  %p1732_p8 = pmov %p1731_p6 }
  0x54   : > { %v1374_v0 = vmov 0   ;;  %v1113_v1 = vld [vmem:[#allocation5 + $0x74] ss:$8 sps:$4 sm:$0xff]   ;;  %v1115_v2 = vld [vmem:[#allocation5 + $0x70] ss:$8 sps:$4 sm:$0xff]   ;;  %v275_v21 = vld [vmem:[%s1547_s15] sm:$0xff]  ;;  %v317_v57 = vlaneseq }
  0x55   : > { %1346 = vsyncadd (%p1732_p8), [#allocation6], 4294963200  ;;  %439 = vmatprep.mubr.bf16.mxu0 %v1374_v0  ;;  %407 = vmatprep.subr.bf16.mxu0 %v1113_v1  ;;  %v1116_v3 = vld [vmem:[#allocation5 + $0x64] ss:$8 sps:$4 sm:$0xff]   ;;  %v1118_v4 = vld [vmem:[#allocation5 + $0x60] ss:$8 sps:$4 sm:$0xff]  }
  0x56   : > { %408 = vmatpush1.bf16.msra.mxu0 %v1115_v2  ;;  %v1119_v5 = vld [vmem:[#allocation5 + $0x54] ss:$8 sps:$4 sm:$0xff]   ;;  %v1121_v6 = vld [vmem:[#allocation5 + $0x50] ss:$8 sps:$4 sm:$0xff]   ;;  %v1122_v7 = vld [vmem:[#allocation5 + $0x44] ss:$8 sps:$4 sm:$0xff]  }
  0x57   : > { %409 = vmatprep.subr.bf16.mxu0 %v1116_v3  ;;  %v1124_v8 = vld [vmem:[#allocation5 + $0x40] ss:$8 sps:$4 sm:$0xff]   ;;  %v1125_v9 = vld [vmem:[#allocation5 + $0x34] ss:$8 sps:$4 sm:$0xff]   ;;  %v1127_v10 = vld [vmem:[#allocation5 + $0x30] ss:$8 sps:$4 sm:$0xff]  }
  0x58   : > { %v1128_v11 = vld [vmem:[#allocation5 + $0x24] ss:$8 sps:$4 sm:$0xff]   ;;  %v1137_v12 = vld [vmem:[#allocation7 + $0x78] sm:$0xff]   ;;  %v1130_v13 = vld [vmem:[#allocation5 + $0x20] ss:$8 sps:$4 sm:$0xff]   ;;  %v318_v58 = vshrl.u32 %v317_v57, 7 }
  0x59   : > { %v1138_v14 = vld [vmem:[#allocation7 + $0x38] sm:$0xff]   ;;  %975 = vmatprep.subr.bf16.mxu1 %v1137_v12  ;;  %v1139_v15 = vld [vmem:[#allocation7 + $0x70] sm:$0xff]   ;;  %v1134_v19 = vld [vmem:[#allocation5 + $0x4] ss:$8 sps:$4 sm:$0xff]   ;;  %s1628_s14 = scalar_lea.vmem [#allocation8], %s931_s8  ;;  %s974_s16 = sshll.u32 %s1429_s22, 11 }
  0x5a   : > { %410 = vmatpush1.bf16.msra.mxu0 %v1118_v4  ;;  %976 = vmatpush3.bf16.msra.mxu1 %v1138_v14  ;;  %v1140_v16 = vld [vmem:[#allocation7 + $0x30] sm:$0xff]   ;;  %v1136_v20 = vld [vmem:[#allocation5] ss:$8 sps:$4 sm:$0xff]   ;;  %v278_v25 = vld [vmem:[%s1547_s15 + $0x18] sm:$0xff]  ;;  %v323_v59 = vsub.s32 1, %v318_v58  ;;  %v319_v61 = vsub.s32 0, %v318_v58  ;;  %s1664_s13 = scalar_lea.hbm %s1716_s5, %s974_s16 }
  0x5b   : > { %411 = vmatprep.subr.bf16.mxu0 %v1119_v5  ;;  %v1131_v17 = vld [vmem:[#allocation5 + $0x14] ss:$8 sps:$4 sm:$0xff]   ;;  %977 = vmatprep.subr.bf16.mxu1 %v1139_v15  ;;  %v1133_v18 = vld [vmem:[#allocation5 + $0x10] ss:$8 sps:$4 sm:$0xff]   ;;  %v276_v22 = vld [vmem:[%s1547_s15 + $0x8] sm:$0xff]  ;;  %s830_s10 = sshll.u32 %s1628_s14, 4  ;;  %s1666_s10 = int_to_ptr.vmem [resolvable:$true] %s830_s10 }
  0x5c   : > { %v291_v23 = vpack.c.bf16 %v276_v22, %v275_v21  ;;  %v277_v24 = vld [vmem:[%s1547_s15 + $0x10] sm:$0xff]  ;;  %v279_v27 = vld [vmem:[%s1547_s15 + $0x20] sm:$0xff]  ;;  %v280_v28 = vld [vmem:[%s1547_s15 + $0x28] sm:$0xff]  ;;  %s817_s27 = scalar_lea.sflag [#allocation4], %s1541_s6  ;;  %s1297_s23 = scalar_lea.vmem %s1666_s10, 2048 }
  0x5d   : > { %v292_v26 = vpack.c.bf16 %v278_v25, %v277_v24  ;;  %v293_v29 = vpack.c.bf16 %v280_v28, %v279_v27  ;;  %v281_v30 = vld [vmem:[%s1547_s15 + $0x30] sm:$0xff]  ;;  %v282_v31 = vld [vmem:[%s1547_s15 + $0x38] sm:$0xff]  ;;  %v283_v33 = vld [vmem:[%s1547_s15 + $0x40] sm:$0xff]  ;;  %p1298_p10 = scmp.ne.s32.totalorder %s1666_s10, %s1297_s23  ;;  %p1733_p2 = scmp.ne.s32.totalorder %s1726_s30, 0 }
  0x5e   : > { %412 = vmatpush1.bf16.msra.mxu0 %v1121_v6  ;;  %978 = vmatpush3.bf16.msra.mxu1 %v1140_v16  ;;  %v294_v32 = vpack.c.bf16 %v282_v31, %v281_v30  ;;  %v284_v34 = vld [vmem:[%s1547_s15 + $0x48] sm:$0xff]  ;;  %v285_v36 = vld [vmem:[%s1547_s15 + $0x50] sm:$0xff]  ;;  %v286_v37 = vld [vmem:[%s1547_s15 + $0x58] sm:$0xff]  ;;  %s1375_s22 = smov [#allocation8]  }
  0x5f   : > { %413 = vmatprep.subr.bf16.mxu0 %v1122_v7  ;;  %v295_v35 = vpack.c.bf16 %v284_v34, %v283_v33  ;;  %v296_v38 = vpack.c.bf16 %v286_v37, %v285_v36  ;;  %v287_v39 = vld [vmem:[%s1547_s15 + $0x60] sm:$0xff]  ;;  %v288_v40 = vld [vmem:[%s1547_s15 + $0x68] sm:$0xff]  ;;  %v289_v42 = vld [vmem:[%s1547_s15 + $0x70] sm:$0xff]  ;;  %p1299_p7 = pnand %p1298_p10, %p1733_p2  ;;  %s1301_s8 = sshll.u32 %s1375_s22, 4  ;;  %s1302_s8 = int_to_ptr.vmem [resolvable:$false] %s1301_s8 }
  0x60   : > { %v297_v41 = vpack.c.bf16 %v288_v40, %v287_v39  ;;  %v290_v43 = vld [vmem:[%s1547_s15 + $0x78] sm:$0xff]  ;;  %v1141_v45 = vld [vmem:[#allocation7 + $0x68] sm:$0xff]   ;;  %v1143_v47 = vld [vmem:[#allocation7 + $0x60] sm:$0xff]   ;;  %s1303_s7 = scalar_lea.vmem %s1302_s8, 4096  ;;  %p1304_p13 = scmp.lt.s32.totalorder %s1666_s10, %s1302_s8 }
  0x61   : > { %v298_v44 = vpack.c.bf16 %v290_v43, %v289_v42  ;;  %v1142_v46 = vld [vmem:[#allocation7 + $0x28] sm:$0xff]   ;;  %979 = vmatprep.subr.bf16.mxu1 %v1141_v45  ;;  %v1144_v48 = vld [vmem:[#allocation7 + $0x20] sm:$0xff]   ;;  %v1145_v49 = vld [vmem:[#allocation7 + $0x58] sm:$0xff]   ;;  %p1300_p12 = pneg %p1299_p7  ;;  %p1305_p0 = scmp.lt.s32.totalorder %s1303_s7, %s1297_s23 }
  0x62   : > { %414 = vmatpush1.bf16.msra.mxu0 %v1124_v8  ;;  %980 = vmatpush3.bf16.msra.mxu1 %v1142_v46  ;;  %v1146_v50 = vld [vmem:[#allocation7 + $0x18] sm:$0xff]   ;;  %v1147_v51 = vld [vmem:[#allocation7 + $0x50] sm:$0xff]   ;;  %v1149_v53 = vld [vmem:[#allocation7 + $0x48] sm:$0xff]  }
  0x63   : > { %415 = vmatprep.subr.bf16.mxu0 %v1125_v9  ;;  %981 = vmatprep.subr.bf16.mxu1 %v1143_v47  ;;  %v1148_v52 = vld [vmem:[#allocation7 + $0x10] sm:$0xff]   ;;  %v1150_v54 = vld [vmem:[#allocation7 + $0x8] sm:$0xff]   ;;  %v1151_v55 = vld [vmem:[#allocation7 + $0x40] sm:$0xff]   ;;  %p1306_p5 = por %p1305_p0, %p1304_p13 }
  0x64   : > { %v1152_v56 = vld [vmem:[#allocation7] sm:$0xff]  }
  0x65   : > { %v315_v60 = vld [vmem:[%s1713_s2] sm:$0x3]  ;;  %p1307_p3 = pnand %p1306_p5, %p1300_p12 }
  0x66   : > { %416 = vmatpush1.bf16.msra.mxu0 %v1127_v10  ;;  %982 = vmatpush3.bf16.msra.mxu1 %v1144_v48  ;;  %v1584_v62 = vrot.slane %v315_v60, %v323_v59 }
  0x67   : > { %417 = vmatprep.subr.bf16.mxu0 %v1128_v11  ;;  %983 = vmatprep.subr.bf16.mxu1 %v1145_v49 }
  0x6a   : > { %418 = vmatpush1.bf16.msra.mxu0 %v1130_v13  ;;  %984 = vmatpush3.bf16.msra.mxu1 %v1146_v50 }
  0x6b   : > { %419 = vmatprep.subr.bf16.mxu0 %v1131_v17  ;;  %985 = vmatprep.subr.bf16.mxu1 %v1147_v51 }
  0x6e   : > { %420 = vmatpush1.bf16.msra.mxu0 %v1133_v18  ;;  %986 = vmatpush3.bf16.msra.mxu1 %v1148_v52 }
  0x6f   : > { %421 = vmatprep.subr.bf16.mxu0 %v1134_v19  ;;  %987 = vmatprep.subr.bf16.mxu1 %v1149_v53 }
  0x72   : > { %422 = vmatpush1.bf16.msra.mxu0 %v1136_v20  ;;  %988 = vmatpush3.bf16.msra.mxu1 %v1150_v54 }
  0x73   : > { %989 = vmatprep.subr.bf16.mxu1 %v1151_v55 }
  0x75   : > { %440 = vmatmul.mubr.bf16.vlgmr.msra.gmra.mxu0 %v291_v23 }
  0x76   : > { %449 = vmatprep.mubr.bf16.mxu0 %v1374_v0  ;;  %990 = vmatpush3.bf16.msra.mxu1 %v1152_v56 }
  0x7d   : > { %450 = vmatmul.mubr.bf16.gmra.mxu0 %v292_v26 }
  0x7e   : > { %459 = vmatprep.mubr.bf16.mxu0 %v1374_v0 }
  0x85   : > { %460 = vmatmul.mubr.bf16.gmra.mxu0 %v293_v29 }
  0x86   : > { %469 = vmatprep.mubr.bf16.mxu0 %v1374_v0 }
  0x8d   : > { %470 = vmatmul.mubr.bf16.gmra.mxu0 %v294_v32 }
  0x8e   : > { %479 = vmatprep.mubr.bf16.mxu0 %v1374_v0 }
  0x95   : > { %480 = vmatmul.mubr.bf16.gmra.mxu0 %v295_v35 }
  0x96   : > { %489 = vmatprep.mubr.bf16.mxu0 %v1374_v0 }
  0x9d   : > { %490 = vmatmul.mubr.bf16.gmra.mxu0 %v296_v38 }
  0x9e   : > { %499 = vmatprep.mubr.bf16.mxu0 %v1374_v0 }
  0xa5   : > { %500 = vmatmul.mubr.bf16.gmra.mxu0 %v297_v41 }
  0xa6   : > { %509 = vmatprep.mubr.bf16.mxu0 %v1374_v0  ;;  %v1586_v0 = vrot.slane %v315_v60, %v319_v61 }
  0xad   : > { %510 = vmatmul.mubr.bf16.gmra.mxu0 %v298_v44 }
 0x135   : > { %v441_v63 = vpop.f32.mrf.mxu0 }
 0x136   : > { %v442_v5 = vadd.f32 %v441_v63, %v1586_v0 }
 0x137   : > { %v443_v1 = vpop.f32.mrf.mxu0 }
 0x138   : > { %v444_v2 = vadd.f32 %v443_v1, %v1584_v62 }
 0x139   : > { %v445_v3 = vpop.f32.mrf.mxu0 }
 0x13a   : > { %v446_v4 = vadd.f32 %v445_v3, %v1586_v0  ;;  %1153 = vtanh.f32 %v444_v2 }
 0x13b   : > { %v447_v6 = vpop.f32.mrf.mxu0 }
 0x13c   : > { %v448_v7 = vadd.f32 %v447_v6, %v1584_v62  ;;  %1155 = vtanh.f32 %v446_v4 }
 0x13d   : > { %v451_v8 = vpop.f32.mrf.mxu0 }
 0x13e   : > { %1157 = vtanh.f32 %v448_v7  ;;  %v452_v13 = vadd.f32 %v451_v8, %v1586_v0 }
 0x13f   : > { %1159 = vtanh.f32 %v442_v5  ;;  %v453_v9 = vpop.f32.mrf.mxu0 }
 0x140   : > { %v454_v10 = vadd.f32 %v453_v9, %v1584_v62 }
 0x141   : > { %v455_v11 = vpop.f32.mrf.mxu0 }
 0x142   : > { %v456_v12 = vadd.f32 %v455_v11, %v1586_v0  ;;  %1161 = vtanh.f32 %v454_v10 }
 0x143   : > { %v457_v14 = vpop.f32.mrf.mxu0 }
 0x144   : > { %v458_v15 = vadd.f32 %v457_v14, %v1584_v62  ;;  %1163 = vtanh.f32 %v456_v12 }
 0x145   : > { %v461_v16 = vpop.f32.mrf.mxu0 }
 0x146   : > { %1165 = vtanh.f32 %v458_v15  ;;  %v462_v24 = vadd.f32 %v461_v16, %v1586_v0 }
 0x147   : > { %1167 = vtanh.f32 %v452_v13  ;;  %v463_v17 = vpop.f32.mrf.mxu0  ;;  %v1154_v19 = vpop.eup %1153 }
 0x148   : > { %v464_v18 = vadd.f32 %v463_v17, %v1584_v62 }
 0x149   : > { %v465_v20 = vpop.f32.mrf.mxu0  ;;  %v1156_v21 = vpop.eup %1155 }
 0x14a   : > { %v466_v22 = vadd.f32 %v465_v20, %v1586_v0  ;;  %1169 = vtanh.f32 %v464_v18 }
 0x14b   : > { %v1158_v23 = vpop.eup %1157  ;;  %v467_v25 = vpop.f32.mrf.mxu0 }
 0x14c   : > { %v1160_v26 = vpop.eup %1159  ;;  %v468_v27 = vadd.f32 %v467_v25, %v1584_v62  ;;  %v553_v28 = vpack.c.bf16 %v1158_v23, %v1154_v19  ;;  %1171 = vtanh.f32 %v466_v22 }
 0x14d   : > { %v471_v29 = vpop.f32.mrf.mxu0  ;;  %v552_v30 = vpack.c.bf16 %v1156_v21, %v1160_v26 }
 0x14e   : > { %1173 = vtanh.f32 %v468_v27  ;;  %735 = vmatprep.mubr.bf16.mxu1 %v553_v28  ;;  %v472_v38 = vadd.f32 %v471_v29, %v1586_v0 }
 0x14f   : > { %1175 = vtanh.f32 %v462_v24  ;;  %v473_v31 = vpop.f32.mrf.mxu0  ;;  %736 = vmatmul.mubr.bf16.vlgmr.msra.gmra.mxu1 %v552_v30  ;;  %v1162_v33 = vpop.eup %1161 }
 0x150   : > { %v474_v32 = vadd.f32 %v473_v31, %v1584_v62 }
 0x151   : > { %v475_v34 = vpop.f32.mrf.mxu0  ;;  %v1164_v35 = vpop.eup %1163 }
 0x152   : > { %v476_v36 = vadd.f32 %v475_v34, %v1586_v0  ;;  %1177 = vtanh.f32 %v474_v32 }
 0x153   : > { %v1166_v37 = vpop.eup %1165  ;;  %v477_v39 = vpop.f32.mrf.mxu0 }
 0x154   : > { %v1168_v40 = vpop.eup %1167  ;;  %v478_v41 = vadd.f32 %v477_v39, %v1584_v62  ;;  %v555_v42 = vpack.c.bf16 %v1166_v37, %v1162_v33  ;;  %1179 = vtanh.f32 %v476_v36 }
 0x155   : > { %v481_v43 = vpop.f32.mrf.mxu0  ;;  %v554_v44 = vpack.c.bf16 %v1164_v35, %v1168_v40 }
 0x156   : > { %1181 = vtanh.f32 %v478_v41  ;;  %743 = vmatprep.mubr.bf16.mxu1 %v555_v42  ;;  %v482_v52 = vadd.f32 %v481_v43, %v1586_v0 }
 0x157   : > { %1183 = vtanh.f32 %v472_v38  ;;  %v483_v45 = vpop.f32.mrf.mxu0  ;;  %744 = vmatmul.mubr.bf16.gmra.mxu1 %v554_v44  ;;  %v1170_v47 = vpop.eup %1169 }
 0x158   : > { %v484_v46 = vadd.f32 %v483_v45, %v1584_v62 }
 0x159   : > { %v485_v48 = vpop.f32.mrf.mxu0  ;;  %v1172_v49 = vpop.eup %1171 }
 0x15a   : > { %v486_v50 = vadd.f32 %v485_v48, %v1586_v0  ;;  %1185 = vtanh.f32 %v484_v46 }
 0x15b   : > { %v1174_v51 = vpop.eup %1173  ;;  %v487_v53 = vpop.f32.mrf.mxu0 }
 0x15c   : > { %v1176_v54 = vpop.eup %1175  ;;  %v488_v55 = vadd.f32 %v487_v53, %v1584_v62  ;;  %v557_v56 = vpack.c.bf16 %v1174_v51, %v1170_v47  ;;  %1187 = vtanh.f32 %v486_v50 }
 0x15d   : > { %v491_v57 = vpop.f32.mrf.mxu0  ;;  %v556_v58 = vpack.c.bf16 %v1172_v49, %v1176_v54  ;;  %v1623_v49 = vld [vmem:[%s1715_s4] ss:$0 sm:$0xff] }
 0x15e   : > { %1189 = vtanh.f32 %v488_v55  ;;  %751 = vmatprep.mubr.bf16.mxu1 %v557_v56  ;;  %v492_v4 = vadd.f32 %v491_v57, %v1586_v0 }
 0x15f   : > { %1191 = vtanh.f32 %v482_v52  ;;  %v493_v59 = vpop.f32.mrf.mxu0  ;;  %752 = vmatmul.mubr.bf16.gmra.mxu1 %v556_v58  ;;  %v1178_v61 = vpop.eup %1177 }
 0x160   : > { %v494_v60 = vadd.f32 %v493_v59, %v1584_v62 }
 0x161   : > { %v495_v63 = vpop.f32.mrf.mxu0  ;;  %v1180_v1 = vpop.eup %1179 }
 0x162   : > { %v496_v2 = vadd.f32 %v495_v63, %v1586_v0  ;;  %1193 = vtanh.f32 %v494_v60 }
 0x163   : > { %v1182_v3 = vpop.eup %1181  ;;  %v497_v5 = vpop.f32.mrf.mxu0 }
 0x164   : > { %v1184_v6 = vpop.eup %1183  ;;  %v498_v7 = vadd.f32 %v497_v5, %v1584_v62  ;;  %v559_v8 = vpack.c.bf16 %v1182_v3, %v1178_v61  ;;  %1195 = vtanh.f32 %v496_v2 }
 0x165   : > { %v501_v9 = vpop.f32.mrf.mxu0  ;;  %v558_v10 = vpack.c.bf16 %v1180_v1, %v1184_v6 }
 0x166   : > { %1197 = vtanh.f32 %v498_v7  ;;  %759 = vmatprep.mubr.bf16.mxu1 %v559_v8  ;;  %v502_v18 = vadd.f32 %v501_v9, %v1586_v0 }
 0x167   : > { %1199 = vtanh.f32 %v492_v4  ;;  %v503_v11 = vpop.f32.mrf.mxu0  ;;  %760 = vmatmul.mubr.bf16.gmra.mxu1 %v558_v10  ;;  %v1186_v13 = vpop.eup %1185 }
 0x168   : > { %v504_v12 = vadd.f32 %v503_v11, %v1584_v62 }
 0x169   : > { %v505_v14 = vpop.f32.mrf.mxu0  ;;  %v1188_v15 = vpop.eup %1187 }
 0x16a   : > { %v506_v16 = vadd.f32 %v505_v14, %v1586_v0  ;;  %1201 = vtanh.f32 %v504_v12 }
 0x16b   : > { %v1190_v17 = vpop.eup %1189  ;;  %v507_v19 = vpop.f32.mrf.mxu0 }
 0x16c   : > { %v1192_v20 = vpop.eup %1191  ;;  %v508_v21 = vadd.f32 %v507_v19, %v1584_v62  ;;  %v561_v22 = vpack.c.bf16 %v1190_v17, %v1186_v13  ;;  %1203 = vtanh.f32 %v506_v16 }
 0x16d   : > { %v511_v23 = vpop.f32.mrf.mxu0  ;;  %v560_v24 = vpack.c.bf16 %v1188_v15, %v1192_v20 }
 0x16e   : > { %1205 = vtanh.f32 %v508_v21  ;;  %767 = vmatprep.mubr.bf16.mxu1 %v561_v22  ;;  %v512_v32 = vadd.f32 %v511_v23, %v1586_v0 }
 0x16f   : > { %1207 = vtanh.f32 %v502_v18  ;;  %v513_v25 = vpop.f32.mrf.mxu0  ;;  %768 = vmatmul.mubr.bf16.gmra.mxu1 %v560_v24  ;;  %v1194_v27 = vpop.eup %1193 }
 0x170   : > { %v514_v26 = vadd.f32 %v513_v25, %v1584_v62 }
 0x171   : > { %v515_v28 = vpop.f32.mrf.mxu0  ;;  %v1196_v29 = vpop.eup %1195 }
 0x172   : > { %v516_v30 = vadd.f32 %v515_v28, %v1586_v0  ;;  %1209 = vtanh.f32 %v514_v26 }
 0x173   : > { %v1198_v31 = vpop.eup %1197  ;;  %v517_v33 = vpop.f32.mrf.mxu0 }
 0x174   : > { %v1200_v34 = vpop.eup %1199  ;;  %v518_v35 = vadd.f32 %v517_v33, %v1584_v62  ;;  %v563_v36 = vpack.c.bf16 %v1198_v31, %v1194_v27  ;;  %1211 = vtanh.f32 %v516_v30 }
 0x175   : > { %v562_v37 = vpack.c.bf16 %v1196_v29, %v1200_v34 }
 0x176   : > { %1213 = vtanh.f32 %v518_v35  ;;  %775 = vmatprep.mubr.bf16.mxu1 %v563_v36 }
 0x177   : > { %1215 = vtanh.f32 %v512_v32  ;;  %776 = vmatmul.mubr.bf16.gmra.mxu1 %v562_v37  ;;  %v1202_v38 = vpop.eup %1201 }
 0x179   : > { %v1204_v39 = vpop.eup %1203 }
 0x17b   : > { %v1206_v40 = vpop.eup %1205 }
 0x17c   : > { %v1208_v41 = vpop.eup %1207  ;;  %v565_v42 = vpack.c.bf16 %v1206_v40, %v1202_v38 }
 0x17d   : > { %v564_v43 = vpack.c.bf16 %v1204_v39, %v1208_v41 }
 0x17e   : > { %783 = vmatprep.mubr.bf16.mxu1 %v565_v42 }
 0x17f   : > { %784 = vmatmul.mubr.bf16.gmra.mxu1 %v564_v43  ;;  %v1210_v0 = vpop.eup %1209 }
 0x181   : > { %v1212_v44 = vpop.eup %1211 }
 0x183   : > { %v1214_v45 = vpop.eup %1213 }
 0x184   : > { %v1216_v62 = vpop.eup %1215  ;;  %v567_v46 = vpack.c.bf16 %v1214_v45, %v1210_v0 }
 0x185   : > { %v566_v47 = vpack.c.bf16 %v1212_v44, %v1216_v62 }
 0x186   : > { %791 = vmatprep.mubr.bf16.mxu1 %v567_v46 }
 0x187   : > { %792 = vmatmul.mubr.bf16.gmra.mxu1 %v566_v47 }
 0x20f   : > { %v991_v48 = vpop.f32.mrf.mxu1 }
 0x211   : > { %v992_v50 = vpop.f32.mrf.mxu1 }
 0x212   : > { %v993_v51 = vadd.f32 %v992_v50, %v991_v48 }
 0x213   : > { %v994_v52 = vpop.f32.mrf.mxu1 }
 0x214   : > { %v738_v53 = vadd.f32 %v993_v51, %v1623_v49 }
 0x215   : > { %v995_v54 = vpop.f32.mrf.mxu1 }
 0x216   : > { %800 = vst [vmem:[%s1628_s14] sm:$0xff] %v738_v53  ;;  %v996_v55 = vadd.f32 %v995_v54, %v994_v52 }
 0x217   : > { %v997_v56 = vpop.f32.mrf.mxu1 }
 0x218   : > { %v741_v57 = vadd.f32 %v996_v55, %v1623_v49 }
 0x219   : > { %v998_v58 = vpop.f32.mrf.mxu1 }
 0x21a   : > { %801 = vst [vmem:[%s1628_s14 + $0x8] sm:$0xff] %v741_v57  ;;  %v999_v59 = vadd.f32 %v998_v58, %v997_v56 }
 0x21b   : > { %v1000_v60 = vpop.f32.mrf.mxu1 }
 0x21c   : > { %v746_v61 = vadd.f32 %v999_v59, %v1623_v49 }
 0x21d   : > { %v1001_v63 = vpop.f32.mrf.mxu1 }
 0x21e   : > { %802 = vst [vmem:[%s1628_s14 + $0x10] sm:$0xff] %v746_v61  ;;  %v1002_v1 = vadd.f32 %v1001_v63, %v1000_v60 }
 0x21f   : > { %v1003_v2 = vpop.f32.mrf.mxu1 }
 0x220   : > { %v749_v3 = vadd.f32 %v1002_v1, %v1623_v49 }
 0x221   : > { %v1004_v4 = vpop.f32.mrf.mxu1 }
 0x222   : > { %803 = vst [vmem:[%s1628_s14 + $0x18] sm:$0xff] %v749_v3  ;;  %v1005_v5 = vadd.f32 %v1004_v4, %v1003_v2 }
 0x223   : > { %v1006_v6 = vpop.f32.mrf.mxu1 }
 0x224   : > { %v754_v7 = vadd.f32 %v1005_v5, %v1623_v49 }
 0x225   : > { %v1007_v8 = vpop.f32.mrf.mxu1 }
 0x226   : > { %804 = vst [vmem:[%s1628_s14 + $0x20] sm:$0xff] %v754_v7  ;;  %v1008_v9 = vadd.f32 %v1007_v8, %v1006_v6 }
 0x227   : > { %v1009_v10 = vpop.f32.mrf.mxu1 }
 0x228   : > { %v757_v11 = vadd.f32 %v1008_v9, %v1623_v49 }
 0x229   : > { %v1010_v12 = vpop.f32.mrf.mxu1 }
 0x22a   : > { %805 = vst [vmem:[%s1628_s14 + $0x28] sm:$0xff] %v757_v11  ;;  %v1011_v13 = vadd.f32 %v1010_v12, %v1009_v10 }
 0x22b   : > { %v1012_v14 = vpop.f32.mrf.mxu1 }
 0x22c   : > { %v762_v15 = vadd.f32 %v1011_v13, %v1623_v49 }
 0x22d   : > { %v1013_v16 = vpop.f32.mrf.mxu1 }
 0x22e   : > { %806 = vst [vmem:[%s1628_s14 + $0x30] sm:$0xff] %v762_v15  ;;  %v1014_v17 = vadd.f32 %v1013_v16, %v1012_v14 }
 0x22f   : > { %v1015_v18 = vpop.f32.mrf.mxu1 }
 0x230   : > { %v765_v19 = vadd.f32 %v1014_v17, %v1623_v49 }
 0x231   : > { %v1016_v20 = vpop.f32.mrf.mxu1 }
 0x232   : > { %807 = vst [vmem:[%s1628_s14 + $0x38] sm:$0xff] %v765_v19  ;;  %v1017_v21 = vadd.f32 %v1016_v20, %v1015_v18 }
 0x233   : > { %v1018_v22 = vpop.f32.mrf.mxu1 }
 0x234   : > { %v770_v23 = vadd.f32 %v1017_v21, %v1623_v49 }
 0x235   : > { %v1019_v24 = vpop.f32.mrf.mxu1 }
 0x236   : > { %808 = vst [vmem:[%s1628_s14 + $0x40] sm:$0xff] %v770_v23  ;;  %v1020_v25 = vadd.f32 %v1019_v24, %v1018_v22 }
 0x237   : > { %v1021_v26 = vpop.f32.mrf.mxu1 }
 0x238   : > { %v773_v27 = vadd.f32 %v1020_v25, %v1623_v49 }
 0x239   : > { %v1022_v28 = vpop.f32.mrf.mxu1 }
 0x23a   : > { %809 = vst [vmem:[%s1628_s14 + $0x48] sm:$0xff] %v773_v27  ;;  %v1023_v29 = vadd.f32 %v1022_v28, %v1021_v26 }
 0x23b   : > { %v1024_v30 = vpop.f32.mrf.mxu1 }
 0x23c   : > { %v778_v31 = vadd.f32 %v1023_v29, %v1623_v49 }
 0x23d   : > { %v1025_v32 = vpop.f32.mrf.mxu1 }
 0x23e   : > { %810 = vst [vmem:[%s1628_s14 + $0x50] sm:$0xff] %v778_v31  ;;  %v1026_v33 = vadd.f32 %v1025_v32, %v1024_v30 }
 0x23f   : > { %v1027_v34 = vpop.f32.mrf.mxu1 }
 0x240   : > { %v781_v35 = vadd.f32 %v1026_v33, %v1623_v49 }
 0x241   : > { %v1028_v36 = vpop.f32.mrf.mxu1 }
 0x242   : > { %811 = vst [vmem:[%s1628_s14 + $0x58] sm:$0xff] %v781_v35  ;;  %v1029_v37 = vadd.f32 %v1028_v36, %v1027_v34 }
 0x243   : > { %v1030_v38 = vpop.f32.mrf.mxu1 }
 0x244   : > { %v786_v39 = vadd.f32 %v1029_v37, %v1623_v49 }
 0x245   : > { %v1031_v40 = vpop.f32.mrf.mxu1 }
 0x246   : > { %812 = vst [vmem:[%s1628_s14 + $0x60] sm:$0xff] %v786_v39  ;;  %v1032_v41 = vadd.f32 %v1031_v40, %v1030_v38 }
 0x247   : > { %v1033_v42 = vpop.f32.mrf.mxu1 }
 0x248   : > { %v789_v43 = vadd.f32 %v1032_v41, %v1623_v49 }
 0x249   : > { %v1034_v0 = vpop.f32.mrf.mxu1 }
 0x24a   : > { %813 = vst [vmem:[%s1628_s14 + $0x68] sm:$0xff] %v789_v43  ;;  %v1035_v44 = vadd.f32 %v1034_v0, %v1033_v42 }
 0x24b   : > { %v1036_v45 = vpop.f32.mrf.mxu1 }
 0x24c   : > { %v794_v62 = vadd.f32 %v1035_v44, %v1623_v49 }
 0x24d   : > { %v1037_v46 = vpop.f32.mrf.mxu1 }
 0x24e   : > { %814 = vst [vmem:[%s1628_s14 + $0x70] sm:$0xff] %v794_v62  ;;  %v1038_v47 = vadd.f32 %v1037_v46, %v1036_v45 }
 0x250   : > { %v797_v48 = vadd.f32 %v1038_v47, %v1623_v49 }
 0x252   : > { %815 = vst [vmem:[%s1628_s14 + $0x78] sm:$0xff] %v797_v48 }
 0x253   : > { %1310 = shalt.err (!%p1307_p3)
}
 0x254   : > { %s1311_s15 = scalar_lea.hbm %s1664_s13, 2048  ;;  %s1315_s9 = scalar_lea.hbm %s1716_s5, 4096 }
 0x255   : > { %p1312_p11 = scmp.ne.s32.totalorder %s1664_s13, %s1311_s15  ;;  %p1316_p4 = scmp.lt.s32.totalorder %s1664_s13, %s1716_s5 }
 0x256   : > { %p1317_p6 = scmp.lt.s32.totalorder %s1315_s9, %s1311_s15 }
 0x257   : > { %p1313_p9 = pnand %p1312_p11, %p1733_p2 }
 0x258   : > { %p1318_p8 = por %p1317_p6, %p1316_p4 }
 0x259   : > { %p1314_p1 = pneg %p1313_p9 }
 0x25b   : > { %p1319_p10 = pnand %p1318_p8, %p1314_p1 }
 0x25d   : > { %1322 = shalt.err (!%p1319_p10)
}
 0x25e   : > { %s1376_s16 = smov 128   ;;  %s1377_s11 = smov 8  }
 0x25f   : > { %1049 = dma.vmem_to_hbm [thread:$0]  (%p1733_p2), %s1666_s10, 2048, %s1664_s13, %s817_s27, %s1376_s16, %s1376_s16, %s1377_s11  }
 0x260 PF: > { %s845_s29 = sand.u32 1, %s1353_s18   ;;  %p1734_p7 = scmp.ne.s32.totalorder %s1723_s25, 0 }
 0x261   : > { %p1735_p12 = scmp.ge.s32.totalorder %s1365_s21, 2  ;;  %s846_s23 = scalar_lea.sflag [#allocation4], %s845_s29 }
 0x263   : > { %p1063_p13 = pnand %p1735_p12, %p1734_p7 }
 0x265   : > { %p1064_p0 = pneg %p1063_p13 }
 0x267   : > { %1348 = dma.done.wait (%p1064_p0), %s846_s23, 2048  }
 0x268   : > { %1350 = vsyncadd (%p1064_p0), %s846_s23, 4294965248  ;;  %p19_p5 = scmp.ge.s32.totalorder %s1483_s17, 4   ;;  %s1736_s18 = smov %s1357_s19 }
 0x269   : > { %s1737_s19 = smov %s1361_s20  ;;  %s1738_s20 = smov %s1492_s28 }
 0x26a   : > { %s1739_s21 = smov %s1483_s17  ;;  %21 = sbr.rel (!%p19_p5) target bundleno = 6 (0x6), region = 93 }
 0x26f   :  { %851 = vsyncpa [#allocation3], 1 }
 0x270   :  { %853 = vsyncpa [#allocation3 + $0x1], 1 }
 0x271   :  { %854 = vsyncpa [#allocation6], 1 }
 0x272   :  { %855 = vsyncpa [#allocation4], 1 }
 0x273   :  { %857 = vsyncpa [#allocation4 + $0x1], 1 }

</bundles_post_ra>
